<compile_context>
chip_gen: v7x
topology: tpu7x:2x2x1
jax: 0.10.0
libtpu: 0.0.40
codegen_flags: <defaults>
</compile_context>

<pallas_src>
import functools
import math

import jax
import jax.numpy as jnp
from jax import lax
from jax.experimental import pallas as pl
from jax.experimental.pallas import tpu as pltpu


# ----------------------------------------------------------------------------
# VMEM budget (generation aware)
# ----------------------------------------------------------------------------
@functools.lru_cache(maxsize=None)
def _vmem_budget_bytes():
    """~80% of physical VMEM: ~51 MiB on v7x (64 MiB phys), ~102 MiB on v5e/v6e."""
    cap = None
    try:
        cap = int(pltpu.get_tpu_info().vmem_capacity_bytes)
    except Exception:
        cap = None
    if not cap or cap <= 0:
        cap = 64 * 1024 * 1024  # conservative fallback = v7x physical VMEM
    return (cap * 4) // 5


def _tile_candidates(dim, cap):
    """Divisor tiles of `dim` (multiples of 8, or dim itself), descending, <= cap."""
    cands = set()
    if dim <= cap:
        cands.add(dim)
    t = 1024
    while t >= 8:
        if t <= cap and t <= dim and dim % t == 0:
            cands.add(t)
        t //= 2
    if not cands:
        # TODO(synk): pad ragged dims instead of oversizing the block.
        cands.add(dim)
    return sorted(cands, reverse=True)


# ----------------------------------------------------------------------------
# Blocked linear projection: y = x @ W^T + b   (torch nn.Linear semantics)
# W^T is pre-transposed on the host, so the kernel feeds the MXU directly.
# ----------------------------------------------------------------------------
def _linear_kernel(x_ref, wt_ref, b_ref, o_ref, acc_ref):
    @pl.when(pl.program_id(2) == 0)
    def _():
        acc_ref[...] = jnp.zeros_like(acc_ref)

    wt = wt_ref[...]                                    # (tk, tn), MXU dtype
    x = x_ref[...].astype(wt.dtype)                     # cast activations once
    acc_ref[...] += jnp.dot(x, wt, preferred_element_type=jnp.float32)

    @pl.when(pl.program_id(2) == pl.num_programs(2) - 1)
    def _():
        o_ref[...] = (acc_ref[...] + b_ref[...]).astype(o_ref.dtype)


def linear(x, w_t, b, out_dtype=None):
    """x: (..., K), w_t: (K, N) = W^T (pre-transposed), b: (N,)."""
    *lead, K = x.shape
    N = w_t.shape[1]
    M = int(math.prod(lead))
    out_dtype = out_dtype or x.dtype

    x2 = x.reshape(M, K)
    b2 = b.reshape(1, N).astype(jnp.float32)

    budget = _vmem_budget_bytes()
    xb = x2.dtype.itemsize
    wb = w_t.dtype.itemsize
    ob = jnp.dtype(out_dtype).itemsize

    tm_c = _tile_candidates(M, 512)
    tn_c = _tile_candidates(N, 512)
    tk_c = _tile_candidates(K, 512)
    tm, tn, tk = tm_c[0], tn_c[0], tk_c[0]

    def footprint(tm_, tn_, tk_):
        return (2 * tm_ * tk_ * xb + 2 * tk_ * tn_ * wb + 2 * tn_ * 4
                + 2 * tm_ * tn_ * ob + tm_ * tn_ * 4)

    # Greedily shrink the largest shrinkable tile until the VMEM budget fits.
    while footprint(tm, tn, tk) > budget:
        opts = []
        for cur, cands, name in ((tm, tm_c, "m"), (tn, tn_c, "n"), (tk, tk_c, "k")):
            smaller = [c for c in cands if c < cur]
            if smaller:
                opts.append((cur, name, smaller[0]))
        if not opts:
            break
        opts.sort(reverse=True)
        _, name, new = opts[0]
        if name == "m":
            tm = new
        elif name == "n":
            tn = new
        else:
            tk = new

    # TODO(synk): optional pipeline_mode=pl.Buffered(3) on x/W specs for
    # v5e/v6e if the DMA is still exposed at these tile sizes.
    grid = (M // tm, N // tn, K // tk)
    y = pl.pallas_call(
        _linear_kernel,
        out_shape=jax.ShapeDtypeStruct((M, N), out_dtype),
        grid=grid,
        in_specs=[
            pl.BlockSpec((tm, tk), lambda i, j, k: (i, k)),
            pl.BlockSpec((tk, tn), lambda i, j, k: (k, j)),
            pl.BlockSpec((1, tn), lambda i, j, k: (0, j)),
        ],
        out_specs=pl.BlockSpec((tm, tn), lambda i, j, k: (i, j)),
        scratch_shapes=[pltpu.VMEM((tm, tn), jnp.float32)],
        compiler_params=pltpu.CompilerParams(
            dimension_semantics=("parallel", "parallel", "arbitrary"),
            vmem_limit_bytes=budget,
        ),
    )(x2, w_t, b2)
    return y.reshape(*lead, N)


# ----------------------------------------------------------------------------
# Scaled-dot-product attention.
# Grid = (batch, head-group, L-tile).  Inputs stay in (B, L, heads*E) layout
# (column-block index_maps select Q/K/V and the head group - no slice copies).
# ----------------------------------------------------------------------------
def _attn_kernel(*refs, heads_per_group, head_dim, has_mask, scale):
    if has_mask:
        q_ref, k_ref, v_ref, m_ref, o_ref, a_ref, o_acc = refs
    else:
        q_ref, k_ref, v_ref, o_ref, a_ref, o_acc = refs
        m_ref = None

    E = head_dim
    m = m_ref[0] if has_mask else None                  # (tl, S) additive, f32

    for h in range(heads_per_group):                    # static unroll over heads
        qh = q_ref[0, :, h * E:(h + 1) * E]             # (tl, E)
        kh = k_ref[0, :, h * E:(h + 1) * E]             # (S,  E)
        vh = v_ref[0, :, h * E:(h + 1) * E]             # (S,  E)
        if scale != 1.0:                                # layer bakes scale into Wq
            qh = qh * jnp.asarray(scale, dtype=qh.dtype)
        # q @ k^T without materializing a transpose: contract dim 1 with dim 1.
        s = lax.dot_general(qh, kh, (((1,), (1,)), ((), ())),
                            preferred_element_type=jnp.float32)       # (tl, S)
        if has_mask:
            s = s + m
        s = s - jnp.max(s, axis=-1, keepdims=True)
        p = jnp.exp(s)
        inv = pl.reciprocal(jnp.sum(p, axis=-1, keepdims=True), approx=True)
        p = p * inv                                                   # softmax probs
        a_ref[0, h] = p.astype(a_ref.dtype)
        # Per-head result written at its column offset in the output slab.
        o_acc[:, h * E:(h + 1) * E] = jnp.dot(
            p.astype(vh.dtype), vh, preferred_element_type=jnp.float32)

    # Single lane-dense (tl, Dg) store of the whole head-group slab.
    o_ref[0] = o_acc[...].astype(o_ref.dtype)


def _attn_tiles(L, S, H, E, qkv_bytes, out_bytes, attn_bytes, has_mask, budget):
    """Pick (L-tile, heads-per-group) so the per-step VMEM footprint fits."""
    def footprint(tl, hg):
        dg = hg * E
        fp = 2 * tl * dg * qkv_bytes           # q block (double buffered)
        fp += 2 * 2 * S * dg * qkv_bytes       # k + v blocks
        fp += 2 * tl * dg * out_bytes          # attended output block
        fp += 2 * hg * tl * S * attn_bytes     # attention-matrix output block
        if has_mask:
            fp += 2 * tl * S * 4
        fp += tl * dg * 4                      # output scratch slab
        return fp

    # Head-group sizes: full H, or divisors of H keeping Hg*E lane-aligned.
    hg_cands = [H] + [h for h in range(H - 1, 0, -1)
                      if H % h == 0 and (h * E) % 128 == 0]
    tl_cands = _tile_candidates(L, 512)
    for hg in hg_cands:
        for tl in tl_cands:
            if footprint(tl, hg) <= budget:
                return tl, hg
    # TODO(synk): nothing fits (very long S) -> would need key-axis tiling, but
    # the full (L, S) attention matrix must be materialized anyway per spec.
    return tl_cands[-1], hg_cands[-1]


def sdp_attention(q, k, v, n_heads, head_dim, attn_mask=None, *, scale=None,
                  attn_dtype=jnp.bfloat16, out_dtype=None,
                  q_col_offset=0, k_col_offset=0, v_col_offset=0):
    """q: (B, L, >=q_off+H*E), k/v: (B, S, ...).  Returns (B, L, D), (B, H, L, S)."""
    B, L, _ = q.shape
    S = k.shape[1]
    H, E = n_heads, head_dim
    D = H * E
    out_dtype = out_dtype or q.dtype
    if scale is None:
        scale = 1.0 / math.sqrt(E)

    budget = _vmem_budget_bytes()
    has_mask = attn_mask is not None
    tl, hg = _attn_tiles(L, S, H, E,
                         qkv_bytes=q.dtype.itemsize,
                         out_bytes=jnp.dtype(out_dtype).itemsize,
                         attn_bytes=jnp.dtype(attn_dtype).itemsize,
                         has_mask=has_mask, budget=(budget * 9) // 10)
    G = H // hg
    Dg = hg * E
    assert q_col_offset % Dg == 0 and k_col_offset % Dg == 0 and v_col_offset % Dg == 0
    qo, ko, vo = q_col_offset // Dg, k_col_offset // Dg, v_col_offset // Dg

    kernel = functools.partial(_attn_kernel, heads_per_group=hg, head_dim=E,
                               has_mask=has_mask, scale=float(scale))

    in_specs = [
        pl.BlockSpec((1, tl, Dg), lambda b, g, l, o=qo: (b, l, o + g)),
        pl.BlockSpec((1, S, Dg), lambda b, g, l, o=ko: (b, 0, o + g)),
        pl.BlockSpec((1, S, Dg), lambda b, g, l, o=vo: (b, 0, o + g)),
    ]
    args = [q, k, v]

    if has_mask:
        # TODO(synk): only additive float masks of shape (L,S) / (1|B,L,S) are
        # handled; boolean or (B,1,L,S)-style masks and in-kernel causal-mask
        # generation (iota + where) are not implemented.
        mask = jnp.asarray(attn_mask, jnp.float32)
        if mask.ndim == 2:                       # (L, S) shared across the batch
            mask = mask[None]
        assert mask.ndim == 3 and mask.shape[1:] == (L, S) and mask.shape[0] in (1, B)
        if mask.shape[0] == 1:                   # don't materialize a B-broadcast
            in_specs.append(pl.BlockSpec((1, tl, S), lambda b, g, l: (0, l, 0)))
        else:
            in_specs.append(pl.BlockSpec((1, tl, S), lambda b, g, l: (b, l, 0)))
        args.append(mask)

    out, attn = pl.pallas_call(
        kernel,
        out_shape=(
            jax.ShapeDtypeStruct((B, L, D), out_dtype),
            jax.ShapeDtypeStruct((B, H, L, S), attn_dtype),
        ),
        grid=(B, G, L // tl),
        in_specs=in_specs,
        out_specs=(
            pl.BlockSpec((1, tl, Dg), lambda b, g, l: (b, l, g)),
            pl.BlockSpec((1, hg, tl, S), lambda b, g, l: (b, g, l, 0)),
        ),
        scratch_shapes=[pltpu.VMEM((tl, Dg), jnp.float32)],
        compiler_params=pltpu.CompilerParams(
            dimension_semantics=("parallel", "parallel", "arbitrary"),
            vmem_limit_bytes=budget,
        ),
    )(*args)
    return out, attn


# ----------------------------------------------------------------------------
# AttentionLayer wrapper (parameters + glue reshapes in plain JAX)
# ----------------------------------------------------------------------------
class AttentionLayerPallas:
    def __init__(self, d_model, n_heads, key, compute_dtype=jnp.float32,
                 attn_dtype=jnp.bfloat16):
        self.d_model = d_model
        self.n_heads = n_heads
        self.compute_dtype = compute_dtype
        self.attn_dtype = attn_dtype

        ks = jax.random.split(key, 8)
        bound = 1.0 / math.sqrt(d_model)             # torch nn.Linear default init

        def u(kk, shape):
            return jax.random.uniform(kk, shape, jnp.float32, -bound, bound)

        # torch-layout master weights (f32) — used by the pure-JAX reference.
        self.wq, self.bq = u(ks[0], (d_model, d_model)), u(ks[1], (d_model,))
        self.wk, self.bk = u(ks[2], (d_model, d_model)), u(ks[3], (d_model,))
        self.wv, self.bv = u(ks[4], (d_model, d_model)), u(ks[5], (d_model,))
        self.wo, self.bo = u(ks[6], (d_model, d_model)), u(ks[7], (d_model,))

        # Kernel-side weights: pre-transposed (K, N) in the MXU compute dtype.
        # The 1/sqrt(E) softmax scale is baked into the query projection so the
        # attention kernel never scales the (L, S) score tile.
        E = d_model // n_heads
        scale = 1.0 / math.sqrt(E)
        cd = compute_dtype
        self.wqT = (self.wq.T * scale).astype(cd)
        self.bq_k = self.bq * scale
        self.wkT = self.wk.T.astype(cd)
        self.wvT = self.wv.T.astype(cd)
        self.woT = self.wo.T.astype(cd)
        # Fused projection weights (one matmul instead of 2-3 when inputs alias).
        self.w_qkvT = jnp.concatenate([self.wqT, self.wkT, self.wvT], axis=1)
        self.b_qkv = jnp.concatenate([self.bq_k, self.bk, self.bv])
        self.w_kvT = jnp.concatenate([self.wkT, self.wvT], axis=1)
        self.b_kv = jnp.concatenate([self.bk, self.bv])

    def __call__(self, queries, keys, values, attn_mask=None):
        B, L, D = queries.shape
        H, E = self.n_heads, D // self.n_heads
        cd = self.compute_dtype

        if queries is keys and keys is values:
            # Self-attention: one fused QKV projection; no wrapper-side slices,
            # the attention kernel indexes Q/K/V column blocks directly.
            qkv = linear(queries, self.w_qkvT, self.b_qkv, out_dtype=cd)  # (B,L,3D)
            out, attn = sdp_attention(
                qkv, qkv, qkv, H, E, attn_mask, scale=1.0,
                attn_dtype=self.attn_dtype,
                q_col_offset=0, k_col_offset=D, v_col_offset=2 * D)
        elif keys is values:
            q = linear(queries, self.wqT, self.bq_k, out_dtype=cd)
            kv = linear(keys, self.w_kvT, self.b_kv, out_dtype=cd)        # (B,S,2D)
            out, attn = sdp_attention(
                q, kv, kv, H, E, attn_mask, scale=1.0,
                attn_dtype=self.attn_dtype,
                q_col_offset=0, k_col_offset=0, v_col_offset=D)
        else:
            q = linear(queries, self.wqT, self.bq_k, out_dtype=cd)
            k = linear(keys, self.wkT, self.bk, out_dtype=cd)
            v = linear(values, self.wvT, self.bv, out_dtype=cd)
            out, attn = sdp_attention(q, k, v, H, E, attn_mask, scale=1.0,
                                      attn_dtype=self.attn_dtype)

        out = linear(out, self.woT, self.bo, out_dtype=queries.dtype)
        return out, attn


# ----------------------------------------------------------------------------
# Pure-JAX reference for validation
# ----------------------------------------------------------------------------
def reference(layer, queries, keys, values, attn_mask=None):
    B, L, D = queries.shape
    H, E = layer.n_heads, D // layer.n_heads
    q = (queries @ layer.wq.T + layer.bq).reshape(B, L, H, E)
    k = (keys @ layer.wk.T + layer.bk).reshape(B, -1, H, E)
    v = (values @ layer.wv.T + layer.bv).reshape(B, -1, H, E)
    s = jnp.einsum("blhe,bshe->bhls", q, k) / math.sqrt(E)
    if attn_mask is not None:
        s = s + jnp.asarray(attn_mask, jnp.float32)
    a = jax.nn.softmax(s, axis=-1)
    o = jnp.einsum("bhls,bshe->blhe", a, v).reshape(B, L, D)
    return o @ layer.wo.T + layer.bo, a


if __name__ == "__main__":
    B, L, D, H = 2, 8, 32, 4
    key = jax.random.PRNGKey(0)
    kq, kk, kv, kp = jax.random.split(key, 4)

    queries = jax.random.normal(kq, (B, L, D), jnp.float32)
    keys = jax.random.normal(kk, (B, L, D), jnp.float32)
    values = jax.random.normal(kv, (B, L, D), jnp.float32)

    # --- f32 compute + f32 attention output (tight check), no mask ----------
    layer = AttentionLayerPallas(d_model=D, n_heads=H, key=kp,
                                 compute_dtype=jnp.float32,
                                 attn_dtype=jnp.float32)
    out, attn = layer(queries, keys, values, attn_mask=None)
    jax.block_until_ready((out, attn))
    ref_out, ref_attn = reference(layer, queries, keys, values, None)
    assert out.shape == (B, L, D) and attn.shape == (B, H, L, L)
    assert jnp.allclose(out, ref_out, atol=2e-3, rtol=2e-3)
    assert jnp.allclose(attn, ref_attn, atol=2e-3, rtol=2e-3)

    # --- additive (causal) mask path -----------------------------------------
    causal = jnp.where(jnp.arange(L)[:, None] >= jnp.arange(L)[None, :],
                       0.0, -1e9).astype(jnp.float32)
    out_m, attn_m = layer(queries, keys, values, attn_mask=causal)
    jax.block_until_ready((out_m, attn_m))
    ref_out_m, ref_attn_m = reference(layer, queries, keys, values, causal)
    assert jnp.allclose(out_m, ref_out_m, atol=2e-3, rtol=2e-3)
    assert jnp.allclose(attn_m, ref_attn_m, atol=2e-3, rtol=2e-3)

    # --- fused K/V projection path (keys is values), bf16 attn output -------
    layer_b = AttentionLayerPallas(d_model=D, n_heads=H, key=kp,
                                   compute_dtype=jnp.float32,
                                   attn_dtype=jnp.bfloat16)
    out_kv, attn_kv = layer_b(queries, keys, keys, attn_mask=None)
    jax.block_until_ready((out_kv, attn_kv))
    ref_out_kv, ref_attn_kv = reference(layer_b, queries, keys, keys, None)
    assert jnp.allclose(out_kv, ref_out_kv, atol=2e-3, rtol=2e-3)
    assert jnp.allclose(attn_kv.astype(jnp.float32), ref_attn_kv,
                        atol=1.5e-2, rtol=1.5e-2)

    # --- fused QKV self-attention, bf16 MXU compute + bf16 attn output ------
    layer_bf16 = AttentionLayerPallas(d_model=D, n_heads=H, key=kp,
                                      compute_dtype=jnp.bfloat16,
                                      attn_dtype=jnp.bfloat16)
    out_sa, attn_sa = layer_bf16(queries, queries, queries, attn_mask=None)
    jax.block_until_ready((out_sa, attn_sa))
    ref_out_sa, ref_attn_sa = reference(layer_bf16, queries, queries, queries, None)
    assert jnp.allclose(out_sa, ref_out_sa, atol=5e-2, rtol=5e-2)
    assert jnp.allclose(attn_sa.astype(jnp.float32), ref_attn_sa,
                        atol=5e-2, rtol=5e-2)

    print("KERNEL_OK")
</pallas_src>

<mosaic_0001>
module attributes {stable_mosaic.version = 11 : i64} {
  func.func @_linear_kernel(%arg0: i32, %arg1: i32, %arg2: i32, %arg3: memref<16x32xf32, #tpu.memory_space<vmem>>, %arg4: memref<32x32xf32, #tpu.memory_space<vmem>>, %arg5: memref<1x32xf32, #tpu.memory_space<vmem>>, %arg6: memref<16x32xf32, #tpu.memory_space<vmem>>, %arg7: memref<16x32xf32, #tpu.memory_space<vmem>>) attributes {dimension_semantics = [#tpu.dimension_semantics<parallel>, #tpu.dimension_semantics<parallel>, #tpu.dimension_semantics<arbitrary>], iteration_bounds = array<i64: 1, 1, 1>, scalar_prefetch = 0 : i64, scratch_operands = 1 : i64, tpu.core_type = #tpu.core_type<tc>, window_params = [{transform_indices = @transform_0, window_bounds = array<i64: 16, 32>}, {transform_indices = @transform_1, window_bounds = array<i64: 32, 32>}, {transform_indices = @transform_2, window_bounds = array<i64: 1, 32>}, {transform_indices = @transform_3, window_bounds = array<i64: 16, 32>}]} {
    %c0_i32 = arith.constant 0 : i32
    %0 = arith.cmpi eq, %arg2, %c0_i32 : i32
    %1 = arith.extui %0 : i1 to i32
    %c0_i32_0 = arith.constant 0 : i32
    %2 = arith.cmpi ne, %1, %c0_i32_0 : i32
    scf.if %2 {
      %cst_10 = arith.constant 0.000000e+00 : f32
      %12 = vector.broadcast %cst_10 : f32 to vector<16x32xf32>
      %c0_11 = arith.constant 0 : index
      %c0_12 = arith.constant 0 : index
      %13 = vector.load %arg7[%c0_11, %c0_12] : memref<16x32xf32, #tpu.memory_space<vmem>>, vector<16x32xf32>
      tpu.vector_store %arg7[%c0_11, %c0_12], %12 {strides = array<i32>} : memref<16x32xf32, #tpu.memory_space<vmem>>, vector<16x32xf32>,
    } else {
    }
    %c0 = arith.constant 0 : index
    %c0_1 = arith.constant 0 : index
    %3 = vector.load %arg4[%c0, %c0_1] : memref<32x32xf32, #tpu.memory_space<vmem>>, vector<32x32xf32>
    %c0_2 = arith.constant 0 : index
    %c0_3 = arith.constant 0 : index
    %4 = vector.load %arg3[%c0_2, %c0_3] : memref<16x32xf32, #tpu.memory_space<vmem>>, vector<16x32xf32>
    %c0_4 = arith.constant 0 : index
    %c0_5 = arith.constant 0 : index
    %5 = vector.load %arg7[%c0_4, %c0_5] : memref<16x32xf32, #tpu.memory_space<vmem>>, vector<16x32xf32>
    %cst = arith.constant dense<0.000000e+00> : vector<16x32xf32>
    %6 = tpu.matmul %4, %3, %cst {dimension_numbers = #tpu.dot_dimension_numbers<[1], [0], [0], [1], [0, 0, 1, 1], [], []>} : vector<16x32xf32>, vector<32x32xf32>, vector<16x32xf32> -> vector<16x32xf32>
    %7 = arith.addf %5, %6 : vector<16x32xf32>
    %c0_6 = arith.constant 0 : index
    %c0_7 = arith.constant 0 : index
    %8 = vector.load %arg7[%c0_6, %c0_7] : memref<16x32xf32, #tpu.memory_space<vmem>>, vector<16x32xf32>
    tpu.vector_store %arg7[%c0_6, %c0_7], %7 {strides = array<i32>} : memref<16x32xf32, #tpu.memory_space<vmem>>, vector<16x32xf32>,
    %c0_i32_8 = arith.constant 0 : i32
    %9 = arith.cmpi eq, %arg2, %c0_i32_8 : i32
    %10 = arith.extui %9 : i1 to i32
    %c0_i32_9 = arith.constant 0 : i32
    %11 = arith.cmpi ne, %10, %c0_i32_9 : i32
    scf.if %11 {
      %c0_10 = arith.constant 0 : index
      %c0_11 = arith.constant 0 : index
      %12 = vector.load %arg7[%c0_10, %c0_11] : memref<16x32xf32, #tpu.memory_space<vmem>>, vector<16x32xf32>
      %c0_12 = arith.constant 0 : index
      %c0_13 = arith.constant 0 : index
      %13 = vector.load %arg5[%c0_12, %c0_13] : memref<1x32xf32, #tpu.memory_space<vmem>>, vector<1x32xf32>
      %14 = vector.broadcast %13 : vector<1x32xf32> to vector<16x32xf32>
      %15 = arith.addf %12, %14 : vector<16x32xf32>
      %c0_14 = arith.constant 0 : index
      %c0_15 = arith.constant 0 : index
      %16 = vector.load %arg6[%c0_14, %c0_15] : memref<16x32xf32, #tpu.memory_space<vmem>>, vector<16x32xf32>
      tpu.vector_store %arg6[%c0_14, %c0_15], %15 {strides = array<i32>} : memref<16x32xf32, #tpu.memory_space<vmem>>, vector<16x32xf32>,
    } else {
    }
    return
  }
  func.func @transform_0(%arg0: i32, %arg1: i32, %arg2: i32) -> (i32, i32) {
    %c0_i32 = arith.constant 0 : i32
    return %arg0, %arg2 : i32, i32
  }
  func.func @transform_1(%arg0: i32, %arg1: i32, %arg2: i32) -> (i32, i32) {
    %c0_i32 = arith.constant 0 : i32
    return %arg2, %arg1 : i32, i32
  }
  func.func @transform_2(%arg0: i32, %arg1: i32, %arg2: i32) -> (i32, i32) {
    %c0_i32 = arith.constant 0 : i32
    %c0_i32_0 = arith.constant 0 : i32
    return %c0_i32, %arg1 : i32, i32
  }
  func.func @transform_3(%arg0: i32, %arg1: i32, %arg2: i32) -> (i32, i32) {
    %c0_i32 = arith.constant 0 : i32
    return %arg0, %arg1 : i32, i32
  }
}

</mosaic_0001>

<bundles_post_ra>
// kernel: tpu_custom_call.1
= control target key start
LH: loop header
LB: loop body
LE: loop exit
PB: predicated region body
PF: predicated region fallthrough
CT: control target
= control target key end

     0   :  { %8 = vsyncpa [#allocation4], 0  ;;  %s366_s0 = inlined_call_operand.hbm [shape: f32[16,32], index: 0, kind: input, shape index: {}]   ;;  %s367_s1 = inlined_call_operand.hbm [shape: f32[32,32], index: 1, kind: input, shape index: {}]   ;;  %s368_s2 = inlined_call_operand.vmem [shape: f32[1,32], index: 2, kind: input, shape index: {}]   ;;  %s369_s3 = inlined_call_operand.hbm [shape: f32[16,32], index: 3, kind: output, shape index: {}]  }
   0x1   :  { %9 = vsyncpa [#allocation7], 0 }
   0x2   :  { %10 = vsyncpa [#allocation5], 0  ;;  %s284_s12 = smov [#allocation3]   ;;  %s212_s16 = scalar_lea.hbm %s366_s0, 256 }
   0x3   :  { %s16_s13 = sshll.u32 %s284_s12, 4  ;;  %p213_p0 = scmp.ne.s32.totalorder %s366_s0, %s212_s16  ;;  %s17_s13 = int_to_ptr.vmem [resolvable:$true] %s16_s13 }
   0x4   :  { %p216_p1 = scmp.lt.u32.totalorder %s212_s16, %s366_s0 }
   0x6   :  { %p218_p2 = pnand %p216_p1, %p213_p0 }
   0x8   :  { %221 = shalt.err (!%p218_p2)
}
   0x9   :  { %s222_s21 = scalar_lea.vmem %s17_s13, 256  ;;  %p227_p4 = scmp.lt.s32.totalorder %s17_s13, %s17_s13 }
   0xa   :  { %p223_p3 = scmp.ne.s32.totalorder %s17_s13, %s222_s21  ;;  %p228_p5 = scmp.lt.s32.totalorder %s222_s21, %s222_s21 }
   0xc   :  { %p229_p6 = por %p228_p5, %p227_p4 }
   0xe   :  { %p230_p7 = pnand %p229_p6, %p223_p3 }
  0x10   :  { %233 = shalt.err (!%p230_p7)
}
  0x11   :  { %s285_s22 = smov 128   ;;  %s286_s23 = smov 8  }
  0x12   :  { %22 = dma.hbm_to_vmem [thread:$0]  %s366_s0, 256, %s17_s13, [#allocation4], %s285_s22, %s285_s22, %s286_s23  }
  0x13   :  { %s287_s26 = smov [#allocation6]   ;;  %s234_s30 = scalar_lea.hbm %s367_s1, 512 }
  0x14   :  { %s28_s27 = sshll.u32 %s287_s26, 4  ;;  %p235_p8 = scmp.ne.s32.totalorder %s367_s1, %s234_s30  ;;  %s29_s27 = int_to_ptr.vmem [resolvable:$true] %s28_s27 }
  0x15   :  { %p238_p9 = scmp.lt.u32.totalorder %s234_s30, %s367_s1 }
  0x17   :  { %p240_p10 = pnand %p238_p9, %p235_p8 }
  0x19   :  { %243 = shalt.err (!%p240_p10)
}
  0x1a   :  { %s244_s8 = scalar_lea.vmem %s29_s27, 512  ;;  %p249_p12 = scmp.lt.s32.totalorder %s29_s27, %s29_s27 }
  0x1b   :  { %p245_p11 = scmp.ne.s32.totalorder %s29_s27, %s244_s8  ;;  %p250_p13 = scmp.lt.s32.totalorder %s244_s8, %s244_s8 }
  0x1d   :  { %p251_p0 = por %p250_p13, %p249_p12 }
  0x1f   :  { %p252_p1 = pnand %p251_p0, %p245_p11 }
  0x21   :  { %255 = shalt.err (!%p252_p1)
}
  0x22   :  { %34 = dma.hbm_to_vmem [thread:$0]  %s367_s1, 512, %s29_s27, [#allocation7], %s285_s22, %s285_s22, %s286_s23  }
  0x23   :  { %278 = dma.done.wait [#allocation4], 256  }
  0x24   :  { %279 = vsyncadd [#allocation4], 4294967040 }
  0x25   :  { %280 = dma.done.wait [#allocation7], 512  }
  0x26   :  { %281 = vsyncadd [#allocation7], 4294966784  ;;  %vm47_vm0 = vcmask 261120   ;;  %v288_v0 = vmov 0.0   ;;  %v50_v1 = vld [vmem:[#allocation6] sm:$0xff]  ;;  %v51_v2 = vld [vmem:[#allocation6 + $0x8] sm:$0xff] }
  0x27   :  { %49 = vst.msk [vmem:[#allocation2 + $0x8] sm:$0xff] %vm47_vm0, %v288_v0  ;;  %48 = vst.msk [vmem:[#allocation2] sm:$0xff] %vm47_vm0, %v288_v0  ;;  %v52_v3 = vld [vmem:[#allocation6 + $0x10] sm:$0xff]  ;;  %v198_v4 = vpack.c.bf16 %v51_v2, %v50_v1  ;;  %v53_v5 = vld [vmem:[#allocation6 + $0x18] sm:$0xff]  ;;  %s289_s11 = smov [#allocation8]  }
  0x28   :  { %v54_v6 = vld [vmem:[#allocation3] sm:$0xff]  ;;  %v202_v7 = vpack.c.bf16 %v53_v5, %v52_v3  ;;  %v55_v8 = vld [vmem:[#allocation3 + $0x8] sm:$0xff]  ;;  %v180_v15 = vld [vmem:[%s368_s2] ss:$0 sm:$0xff]  ;;  %s165_s12 = sshll.u32 %s289_s11, 4  ;;  %s166_s12 = int_to_ptr.vmem [resolvable:$true] %s165_s12 }
  0x29   :  { %195 = vmatprep.mubr.msk.f32.mxu0 %vm47_vm0, %v54_v6  ;;  %199 = vmatprep.subr.bf16.mxu0 %v198_v4  ;;  %s256_s13 = scalar_lea.vmem %s166_s12, 256  ;;  %p261_p3 = scmp.lt.s32.totalorder %s166_s12, %s166_s12 }
  0x2a   :  { %201 = vmatpush3.bf16.msra.mxu0 %v198_v4  ;;  %p257_p2 = scmp.ne.s32.totalorder %s166_s12, %s256_s13  ;;  %p262_p4 = scmp.lt.s32.totalorder %s256_s13, %s256_s13 }
  0x2b   :  { %203 = vmatprep.subr.bf16.mxu0 %v202_v7 }
  0x2c   :  { %p263_p5 = por %p262_p4, %p261_p3 }
  0x2e   :  { %205 = vmatpush3.bf16.msra.mxu0 %v202_v7  ;;  %v57_v9 = vld [vmem:[#allocation2 + $0x8] sm:$0xff]  ;;  %v56_v10 = vld [vmem:[#allocation2] sm:$0xff]  ;;  %p264_p6 = pnand %p263_p5, %p257_p2 }
  0x31   :  { %196 = vmatmul.mubr.msk.f32.vlgmr.msra.gmra.mrb[0].mxu0 %vm47_vm0, %v55_v8 }
 0x104   :  { %v197_v11 = vpop.f32.mrb[0].mxu0 }
 0x105   :  { %v141_v12 = vadd.f32 %v197_v11, %v57_v9  ;;  %v131_v13 = vpop.f32.mrb[1].mxu0 }
 0x106   :  { %v140_v14 = vadd.f32 %v131_v13, %v56_v10 }
 0x107   :  { %143 = vst.msk [vmem:[#allocation2 + $0x8] sm:$0xff] %vm47_vm0, %v141_v12 }
 0x108   :  { %142 = vst.msk [vmem:[#allocation2] sm:$0xff] %vm47_vm0, %v140_v14 }
 0x10e   :  { %v148_v16 = vld [vmem:[#allocation2 + $0x8] sm:$0xff] }
 0x10f   :  { %v147_v17 = vld [vmem:[#allocation2] sm:$0xff]  ;;  %v157_v18 = vadd.f32 %v180_v15, %v148_v16 }
 0x110   :  { %v156_v19 = vadd.f32 %v180_v15, %v147_v17 }
 0x111   :  { %159 = vst.msk [vmem:[#allocation8 + $0x8] sm:$0xff] %vm47_vm0, %v157_v18 }
 0x112   :  { %158 = vst.msk [vmem:[#allocation8] sm:$0xff] %vm47_vm0, %v156_v19 }
 0x113   :  { %267 = shalt.err (!%p264_p6)
}
 0x114   :  { %s268_s15 = scalar_lea.hbm %s369_s3, 256 }
 0x115   :  { %p269_p7 = scmp.ne.s32.totalorder %s369_s3, %s268_s15  ;;  %p272_p8 = scmp.lt.u32.totalorder %s268_s15, %s369_s3 }
 0x117   :  { %p274_p9 = pnand %p272_p8, %p269_p7 }
 0x119   :  { %277 = shalt.err (!%p274_p9)
}
 0x11a   :  { %171 = dma.vmem_to_hbm [thread:$0]  %s166_s12, 256, %s369_s3, [#allocation5], %s285_s22, %s285_s22, %s286_s23  }
 0x11b   :  { %282 = dma.done.wait [#allocation5], 256  }
 0x11c   :  { %283 = vsyncadd [#allocation5], 4294967040 }
 0x11d   :  { %175 = vsyncpa [#allocation4], 1 }
 0x11e   :  { %176 = vsyncpa [#allocation7], 1 }
 0x11f   :  { %177 = vsyncpa [#allocation5], 1 }

</bundles_post_ra>
